<compile_context>
chip_gen: v5e
topology: v5e:2x2
jax: 0.10.0
libtpu: 0.0.40
codegen_flags: <defaults>
</compile_context>

<pallas_src>
import functools

import jax
import jax.numpy as jnp
from jax import lax
from jax.experimental import pallas as pl
from jax.experimental.pallas import tpu as pltpu


def _ce_partial_kernel(x_ref, t_ref, out_ref, *, hw, t_hw):
    """Partial cross-entropy sum for one (batch, spatial-tile) block.

    x_ref  : (1, C, T)      logits (any float dtype), T = spatial tile
    t_ref  : (1, 1, T)      narrow-int class indices
    out_ref: (1, 1, 1, 128) f32; partial CE sum broadcast across lanes
    """
    j = pl.program_id(1)

    x = x_ref[0]                               # (C, T) logits, input dtype
    t = t_ref[0].astype(jnp.int32)             # (1, T) class ids
    c = x.shape[0]

    # Global spatial column index of every lane in this tile.  The logits are
    # NOT padded in HBM, so the ragged last tile may contain garbage/Inf in
    # its out-of-bounds lanes -> must mask with a select, never a multiply.
    col = j * t_hw + lax.broadcasted_iota(jnp.int32, (1, t_hw), 1)
    valid = col < hw                           # (1, T) bool

    # Numerically stable per-pixel cross entropy: lse(x) - x[target].
    # Cheap passes stay in the input dtype; only exp/log runs in f32.
    m = jnp.max(x, axis=0, keepdims=True)                                  # (1, T)
    e = jnp.exp((x - m).astype(jnp.float32))                               # (C, T) f32
    lse = m.astype(jnp.float32) + jnp.log(jnp.sum(e, axis=0, keepdims=True))

    row = lax.broadcasted_iota(jnp.int32, (c, t_hw), 0)                    # (C, T)
    picked = jnp.sum(jnp.where(row == t, x, jnp.zeros_like(x)),
                     axis=0, keepdims=True).astype(jnp.float32)            # (1, T)
    ce = lse - picked                                                      # (1, T)

    # Select, don't multiply: OOB lanes may hold Inf/NaN and would poison a
    # multiply-by-mask.
    partial = jnp.sum(jnp.where(valid, ce, 0.0))
    out_ref[...] = jnp.full(out_ref.shape, partial, dtype=jnp.float32)


def focal_loss_2d(logits_nchw, target_nhw, *, gamma=0.0, weight=None,
                  size_average=True):
    """Pallas implementation of FocalLoss2d.forward for 4D input / 3D target."""
    del weight, size_average  # weight is unused in the reference forward math;
                              # the loss is a scalar so mean == sum.
    # TODO(synk): no ignore_index (-100) handling; reference relies on
    # F.cross_entropy defaults and the common case has no ignored labels.
    n, c, h, w = logits_nchw.shape
    hw = h * w

    x = logits_nchw.reshape(n, c, hw)          # free view of contiguous NCHW

    # Narrow target dtype: in the mem-bound regime target bytes are a real
    # fraction of HBM traffic for small class counts.
    if c <= 127:
        t_dtype = jnp.int8
    elif c <= 32767:
        t_dtype = jnp.int16
    else:
        t_dtype = jnp.int32
    t = target_nhw.reshape(n, 1, hw).astype(t_dtype)

    # --- spatial tile selection -------------------------------------------
    # ~4 MiB of f32 working set per logits tile: big enough to sit at the HBM
    # roofline (per-grid-step overhead ~0.35 us), small enough that the
    # double-buffered inputs plus in-kernel f32 intermediates stay under
    # ~24 MiB, i.e. inside v7x's 32 MiB scoped VMEM (plenty on v5e/v6e).
    tile_budget = 4 * 1024 * 1024
    work_itemsize = max(jnp.dtype(logits_nchw.dtype).itemsize, 4)
    lanes_budget = max(128, (tile_budget // (c * work_itemsize)) // 128 * 128)

    # Keep >=2 grid steps when possible so v7x's two TensorCores both get work.
    min_spatial_tiles = 1 if n >= 2 else 2

    if hw <= 128 or (min_spatial_tiles == 1 and hw <= lanes_budget):
        t_hw, n_tiles = hw, 1          # block == full spatial dim (always legal)
    else:
        t_hw = min(lanes_budget,
                   max(128, pl.cdiv(pl.cdiv(hw, min_spatial_tiles), 128) * 128))
        n_tiles = pl.cdiv(hw, t_hw)

    kernel = functools.partial(_ce_partial_kernel, hw=hw, t_hw=t_hw)

    partials = pl.pallas_call(
        kernel,
        out_shape=jax.ShapeDtypeStruct((n, n_tiles, 1, 128), jnp.float32),
        grid_spec=pltpu.PrefetchScalarGridSpec(
            num_scalar_prefetch=0,
            grid=(n, n_tiles),
            in_specs=[
                # Ragged tail handled in-kernel; logits are never padded or
                # copied in HBM.  Default double-buffering; bump to
                # pipeline_mode=pl.Buffered(3) only if a trace shows exposed DMA.
                pl.BlockSpec((1, c, t_hw), lambda i, j: (i, 0, j)),
                pl.BlockSpec((1, 1, t_hw), lambda i, j: (i, 0, j)),
            ],
            out_specs=pl.BlockSpec((1, 1, 1, 128), lambda i, j: (i, j, 0, 0)),
        ),
        compiler_params=pltpu.CompilerParams(
            dimension_semantics=("parallel", "parallel"),
            vmem_limit_bytes=32 * 1024 * 1024,
        ),
    )(x, t)

    # Tiny epilogue in plain JAX: mean CE over the *real* pixels, then the
    # focal transform applied to the scalar mean (reference-exact PyTorch
    # quirk: pt = exp(-mean CE); size_average irrelevant for a scalar).
    ce_mean = jnp.sum(partials[:, :, 0, 0]) / jnp.float32(n * hw)
    logpt = -ce_mean
    pt = jnp.exp(logpt)
    return -((1.0 - pt) ** jnp.float32(gamma)) * logpt


if __name__ == "__main__":
    key = jax.random.PRNGKey(0)
    k1, k2 = jax.random.split(key)
    N, C, H, W = 2, 4, 16, 16

    logits = jax.random.normal(k1, (N, C, H, W), dtype=jnp.float32)
    target = jax.random.randint(k2, (N, H, W), 0, C, dtype=jnp.int32)
    # Deterministic "weight" parameter (shape (C,)); unused by the forward
    # math, exactly as in the PyTorch reference.
    class_weight = jnp.ones((C,), dtype=jnp.float32)

    loss = focal_loss_2d(logits, target, gamma=2.0, weight=class_weight,
                         size_average=True)
    jax.block_until_ready(loss)

    # Sanity check against a pure-JAX reference of the same math.
    x2d = jnp.transpose(logits, (0, 2, 3, 1)).reshape(-1, C)
    t1d = target.reshape(-1)
    lse = jax.nn.logsumexp(x2d, axis=-1)
    ce_mean = jnp.mean(lse - jnp.take_along_axis(
        x2d, t1d[:, None], axis=-1)[:, 0])
    logpt = -ce_mean
    pt = jnp.exp(logpt)
    ref = -((1.0 - pt) ** 2.0) * logpt
    assert jnp.allclose(loss, ref, rtol=1e-5, atol=1e-5), (loss, ref)

    print("KERNEL_OK")
</pallas_src>

<mosaic_0001>
module attributes {stable_mosaic.version = 11 : i64} {
  func.func @_ce_partial_kernel(%arg0: i32, %arg1: i32, %arg2: memref<1x4x256xf32, #tpu.memory_space<vmem>>, %arg3: memref<1x1x256xi8, #tpu.memory_space<vmem>>, %arg4: memref<1x1x1x128xf32, #tpu.memory_space<vmem>>) attributes {dimension_semantics = [#tpu.dimension_semantics<parallel>, #tpu.dimension_semantics<parallel>], iteration_bounds = array<i64: 2, 1>, scalar_prefetch = 0 : i64, scratch_operands = 0 : i64, tpu.core_type = #tpu.core_type<tc>, window_params = [{transform_indices = @transform_0, window_bounds = array<i64: 1, 4, 256>}, {transform_indices = @transform_1, window_bounds = array<i64: 1, 1, 256>}, {transform_indices = @transform_2, window_bounds = array<i64: 1, 1, 1, 128>}]} {
    %c0 = arith.constant 0 : index
    %c0_0 = arith.constant 0 : index
    %c0_1 = arith.constant 0 : index
    %0 = vector.load %arg2[%c0, %c0_0, %c0_1] : memref<1x4x256xf32, #tpu.memory_space<vmem>>, vector<1x4x256xf32>
    %1 = vector.shape_cast %0 : vector<1x4x256xf32> to vector<4x256xf32>
    %c0_2 = arith.constant 0 : index
    %c0_3 = arith.constant 0 : index
    %c0_4 = arith.constant 0 : index
    %2 = vector.load %arg3[%c0_2, %c0_3, %c0_4] : memref<1x1x256xi8, #tpu.memory_space<vmem>>, vector<1x1x256xi8>
    %3 = vector.shape_cast %2 : vector<1x1x256xi8> to vector<1x256xi8>
    %4 = arith.extsi %3 : vector<1x256xi8> to vector<1x256xi32>
    %c256_i32 = arith.constant 256 : i32
    %5 = arith.muli %arg1, %c256_i32 : i32
    %6 = tpu.iota {dimensions = array<i32: 1>} : vector<1x256xi32>
    %7 = vector.broadcast %5 : i32 to vector<1x256xi32>
    %8 = arith.addi %7, %6 : vector<1x256xi32>
    %c256_i32_5 = arith.constant 256 : i32
    %9 = vector.broadcast %c256_i32_5 : i32 to vector<1x256xi32>
    %10 = arith.cmpi slt, %8, %9 : vector<1x256xi32>
    %cst = arith.constant dense<0xFF800000> : vector<256xf32>
    %11 = vector.multi_reduction <maximumf>, %1, %cst [0] : vector<4x256xf32> to vector<256xf32>
    %12 = vector.shape_cast %11 : vector<256xf32> to vector<1x256xf32>
    %13 = vector.broadcast %12 : vector<1x256xf32> to vector<4x256xf32>
    %14 = arith.subf %1, %13 : vector<4x256xf32>
    %15 = math.exp %14 : vector<4x256xf32>
    %cst_6 = arith.constant dense<0.000000e+00> : vector<256xf32>
    %16 = vector.multi_reduction <add>, %15, %cst_6 [0] : vector<4x256xf32> to vector<256xf32>
    %17 = vector.shape_cast %16 : vector<256xf32> to vector<1x256xf32>
    %18 = math.log %17 : vector<1x256xf32>
    %19 = arith.addf %12, %18 : vector<1x256xf32>
    %20 = tpu.iota {dimensions = array<i32: 0>} : vector<4x256xi32>
    %21 = vector.broadcast %4 : vector<1x256xi32> to vector<4x256xi32>
    %22 = arith.cmpi eq, %20, %21 : vector<4x256xi32>
    %cst_7 = arith.constant 0.000000e+00 : f32
    %23 = vector.broadcast %cst_7 : f32 to vector<4x256xf32>
    %24 = arith.select %22, %1, %23 : vector<4x256xi1>, vector<4x256xf32>
    %cst_8 = arith.constant dense<0.000000e+00> : vector<256xf32>
    %25 = vector.multi_reduction <add>, %24, %cst_8 [0] : vector<4x256xf32> to vector<256xf32>
    %26 = vector.shape_cast %25 : vector<256xf32> to vector<1x256xf32>
    %27 = arith.subf %19, %26 : vector<1x256xf32>
    %cst_9 = arith.constant 0.000000e+00 : f32
    %28 = vector.broadcast %cst_9 : f32 to vector<1x256xf32>
    %29 = arith.select %10, %27, %28 : vector<1x256xi1>, vector<1x256xf32>
    %30 = vector.shape_cast %29 : vector<1x256xf32> to vector<1x1x256xf32>
    %cst_10 = arith.constant dense<0.000000e+00> : vector<1xf32>
    %31 = vector.multi_reduction <add>, %30, %cst_10 [1, 2] : vector<1x1x256xf32> to vector<1xf32>
    %32 = vector.shape_cast %31 : vector<1xf32> to vector<1x1x1xf32>
    %33 = vector.extract %32[0, 0, 0] : f32 from vector<1x1x1xf32>
    %34 = vector.broadcast %33 : f32 to vector<1x1x1x128xf32>
    %c0_11 = arith.constant 0 : index
    %c0_12 = arith.constant 0 : index
    %c0_13 = arith.constant 0 : index
    %c0_14 = arith.constant 0 : index
    %35 = vector.load %arg4[%c0_11, %c0_12, %c0_13, %c0_14] : memref<1x1x1x128xf32, #tpu.memory_space<vmem>>, vector<1x1x1x128xf32>
    tpu.vector_store %arg4[%c0_11, %c0_12, %c0_13, %c0_14], %34 {strides = array<i32>} : memref<1x1x1x128xf32, #tpu.memory_space<vmem>>, vector<1x1x1x128xf32>,
    return
  }
  func.func @transform_0(%arg0: i32, %arg1: i32) -> (i32, i32, i32) {
    %c0_i32 = arith.constant 0 : i32
    %c0_i32_0 = arith.constant 0 : i32
    return %arg0, %c0_i32, %arg1 : i32, i32, i32
  }
  func.func @transform_1(%arg0: i32, %arg1: i32) -> (i32, i32, i32) {
    %c0_i32 = arith.constant 0 : i32
    %c0_i32_0 = arith.constant 0 : i32
    return %arg0, %c0_i32, %arg1 : i32, i32, i32
  }
  func.func @transform_2(%arg0: i32, %arg1: i32) -> (i32, i32, i32, i32) {
    %c0_i32 = arith.constant 0 : i32
    %c0_i32_0 = arith.constant 0 : i32
    %c0_i32_1 = arith.constant 0 : i32
    return %arg0, %arg1, %c0_i32, %c0_i32_0 : i32, i32, i32, i32
  }
}

</mosaic_0001>

<bundles_post_ra>
// kernel: tpu_custom_call.1
= control target key start
LH: loop header
LB: loop body
LE: loop exit
PB: predicated region body
PF: predicated region fallthrough
CT: control target
= control target key end

     0   :  { %7 = vsyncpa [#allocation3], 0  ;;  %s788_s0 = inlined_call_operand.hbm [shape: f32[2,4,256], index: 0, kind: input, shape index: {}]   ;;  %s789_s1 = inlined_call_operand.vmem [shape: s8[2,1,256], index: 1, kind: input, shape index: {}]   ;;  %s790_s2 = inlined_call_operand.hbm [shape: f32[2,1,1,128], index: 2, kind: output, shape index: {}]  }
   0x1   :  { %9 = vsyncpa [#allocation3 + $0x1], 0 }
   0x2   :  { %10 = vsyncpa [#allocation4], 0 }
   0x3   :  { %12 = vsyncpa [#allocation4 + $0x1], 0  ;;  %s647_s9 = smov 0   ;;  %s649_s10 = smov 0  }
   0x4   :  { %s651_s11 = smov 0   ;;  %s653_s12 = smov 0  }
   0x5   :  { %s655_s13 = smov 0   ;;  %s657_s14 = smov 0  }
   0x6 LB: > { %s435_s15 = sadd.s32 4294967295, %s630_s14   ;;  %s436_s16 = sadd.s32 4294967294, %s630_s14   ;;  %s630_s14 = sphi %s657_s14, %s18_s14   ;;  %s626_s13 = sphi %s655_s13, %s799_s13   ;;  %s622_s12 = sphi %s653_s12, %s798_s12   ;;  %s618_s11 = sphi %s651_s11, %s797_s11   ;;  %s614_s10 = sphi %s649_s10, %s796_s10   ;;  %s610_s9 = sphi %s647_s9, %s795_s9  }
   0x7   : > { %s30_s17 = sadd.s32 1, %s626_s13  ;;  %s39_s18 = sadd.s32 1, %s618_s11 }
   0x8   : > { %p32_p0 = scmp.ge.s32.totalorder %s30_s17, 2  ;;  %p46_p1 = scmp.ne.s32.totalorder %s618_s11, %s614_s10 }
   0x9   : > { %p47_p2 = scmp.eq.s32.totalorder %s630_s14, 0  ;;  %p52_p3 = scmp.ne.s32.totalorder %s614_s10, %s610_s9 }
   0xa   : > { %s801_s17 = smov (%p32_p0, %s30_s17), 0  ;;  %p53_p5 = scmp.eq.s32.totalorder %s435_s15, 0 }
   0xb   : > { %p688_p4 = por %p47_p2, %p46_p1  ;;  %s34_s20 = ssub.s32 %s626_s13, %s801_s17 }
   0xc   : > { %p106_p6 = scmp.eq.s32.totalorder %s435_s15, 1  ;;  %p37_p7 = scmp.eq.s32.totalorder %s34_s20, 0 }
   0xd   : > { %p694_p8 = por %p53_p5, %p52_p3  ;;  %p112_p10 = scmp.eq.s32.totalorder %s436_s16, 1 }
   0xe   : > { %p698_p9 = por %p106_p6, %p46_p1  ;;  %p438_p12 = scmp.ge.s32.totalorder %s630_s14, 2 }
   0xf   : > { %s703_s23 = scalar_select %p37_p7, %s618_s11, %s39_s18  }
  0x10   : > { %p705_p11 = por %p112_p10, %p52_p3  ;;  %p462_p13 = scmp.lt.s32.totalorder %s630_s14, 2 }
  0x11   : > { %s132_s25 = sand.u32 1, %s618_s11   ;;  %s447_s27 = sshll.u32 %s626_s13, 3 }
  0x12   : > { %s439_s26 = sshll.u32 %s132_s25, 3  ;;  %s143_s30 = scalar_lea.hbm %s788_s0, %s447_s27 }
  0x13   : > { %s136_s3 = scalar_lea.vmem [#allocation2], %s439_s26  ;;  %s145_s5 = sshll.u32 %s143_s30, 4  ;;  %s146_s5 = int_to_ptr.hbm [resolvable:$true] %s145_s5 }
  0x14   : > { %s147_s4 = sshll.u32 %s136_s3, 4  ;;  %p455_p0 = pnand %p462_p13, %p688_p4  ;;  %s148_s4 = int_to_ptr.vmem [resolvable:$true] %s147_s4 }
  0x15   : > { %p442_p1 = scmp.ge.s32.totalorder %s630_s14, 1  ;;  %p164_p2 = scmp.lt.s32.totalorder %s630_s14, 3 }
  0x16   : > { %s133_s6 = scalar_lea.sflag [#allocation3], %s132_s25 }
  0x17   : > { %457 = dma.hbm_to_vmem [thread:$0]  (!%p455_p0), %s146_s5, 128, %s148_s4, %s133_s6  }
  0x18   : > { %p165_p3 = pnand %p442_p1, %p164_p2 }
  0x19   : > { %s721_s7 = sand.u32 (!%p165_p3), 1, %s614_s10  }
  0x1a   : > { %168 = sbr.rel (%p165_p3) target bundleno = 288 (0x120), region = 28  ;;  %s443_s8 = sshll.u32 (!%p165_p3), %s721_s7, 3 }
  0x1b   : > { %s171_s15 = scalar_lea.sflag (!%p165_p3), [#allocation3], %s721_s7  ;;  %s174_s16 = scalar_lea.vmem (!%p165_p3), [#allocation2], %s443_s8 }
  0x1f   : > { %601 = dma.done.wait (%p694_p8), %s171_s15, 128  }
  0x20   : > { %603 = vsyncadd (%p694_p8), %s171_s15, 4294967168  ;;  %v213_v0 = vld [vmem:[%s174_s16] sm:$0xff]  ;;  %vm231_vm0 = vcmask 1043456   ;;  %p205_p4 = scmp.lt.s32.totalorder %s622_s12, 1  ;;  %v280_v24 = vlaneseq  ;;  %vm313_vm3 = vcmask 1040384   ;;  %s338_s28 = scalar_lea.hbm %s790_s2, %s622_s12 }
  0x21   : > { %226 = vst [vmem:[#allocation1] ss:$2 sm:$0xff] %v213_v0  ;;  %s202_s29 = scalar_lea.vmem [#allocation5], %s721_s7  ;;  %s342_s3 = sshll.u32 %s338_s28, 4  ;;  %s343_s3 = int_to_ptr.hbm [resolvable:$true] %s342_s3 }
  0x22   : > { %s206_s18 = scalar_select %p205_p4, %s622_s12, 1  ;;  %v281_v31 = vshrl.u32 %v280_v24, 7 }
  0x23   : > { %s340_s30 = sshll.u32 %s202_s29, 4  ;;  %s329_s5 = scalar_lea.sflag [#allocation4], %s721_s7  ;;  %s341_s30 = int_to_ptr.vmem [resolvable:$true] %s340_s30 }
  0x24   : > { %s444_s19 = sshll.u32 %s206_s18, 1  ;;  %s562_s6 = sshra.s32 %s343_s3, 4  ;;  %s563_s6 = int_to_ptr.hbm [resolvable:$true] %s562_s6 }
  0x25   : > { %s211_s25 = scalar_lea.vmem %s789_s1, %s444_s19  ;;  %s564_s8 = scalar_lea.hbm %s563_s6, 1 }
  0x26   : > { %v214_v21 = vld [vmem:[%s211_s25] sm:$0x3]  ;;  %p565_p5 = scmp.ne.s32.totalorder %s563_s6, %s564_s8  ;;  %s568_s12 = scalar_lea.hbm %s790_s2, 2 }
  0x27   : > { %v215_v23 = vunpack.c.0.s8 %v214_v21  ;;  %p569_p8 = scmp.lt.s32.totalorder %s563_s6, %s790_s2  ;;  %p570_p10 = scmp.lt.s32.totalorder %s568_s12, %s564_s8 }
  0x28   : > { %v227_v1 = vld.sshfl [vmem:[#allocation1] sm:$0xff pattern:$0x75316420]  ;;  %v228_v2 = vld.sshfl [vmem:[#allocation1 + $0x8] sm:$0xff pattern:$0x75316420]  ;;  %p566_p6 = pnand %p565_p5, %p698_p9 }
  0x29   : > { %v232_v3 = vsel %vm231_vm0, %v227_v1, -inf  ;;  %v239_v4 = vsel %vm231_vm0, %v228_v2, -inf  ;;  %v282_v25 = vperm.slane %v215_v23, 0  ;;  %v283_v26 = vperm.slane %v215_v23, 4  ;;  %p571_p13 = por %p570_p10, %p569_p8 }
  0x2a   : > { %v233_v5 = vrot.slane %v232_v3, 4  ;;  %v240_v6 = vrot.slane %v239_v4, 4  ;;  %p567_p7 = pneg %p566_p6 }
  0x2b   : > { %v284_v34 = vperm.slane %v282_v25, 0  ;;  %v285_v35 = vperm.slane %v283_v26, 0 }
  0x2c   : > { %v234_v7 = vmax.f32 %v232_v3, %v233_v5  ;;  %v241_v8 = vmax.f32 %v239_v4, %v240_v6  ;;  %p572_p0 = pnand %p571_p13, %p567_p7 }
  0x2d   : > { %vm286_vm1 = vcmp.eq.s32.totalorder %v281_v31, %v284_v34  ;;  %vm287_vm2 = vcmp.eq.s32.totalorder %v281_v31, %v285_v35 }
  0x2e   : > { %v235_v9 = vrot.slane %v234_v7, 2  ;;  %v242_v10 = vrot.slane %v241_v8, 2 }
  0x30   : > { %v236_v11 = vmax.f32 %v234_v7, %v235_v9  ;;  %v243_v12 = vmax.f32 %v241_v8, %v242_v10 }
  0x32   : > { %v237_v13 = vrot.slane %v236_v11, 1  ;;  %v244_v14 = vrot.slane %v243_v12, 1 }
  0x34   : > { %v732_v15 = vmax.f32 %v236_v11, %v237_v13  ;;  %v734_v16 = vmax.f32 %v243_v12, %v244_v14 }
  0x36   : > { %v248_v17 = vrot.slane %v734_v16, 4 }
  0x38   : > { %v249_v18 = vsel %vm231_vm0, %v732_v15, %v248_v17 }
  0x39   : > { %v251_v19 = vsub.f32 %v213_v0, %v249_v18 }
  0x3b   : > { %v252_v20 = vmul.f32 1.442695, %v251_v19 }
  0x3d   : > { %512 = vpow2.f32 %v252_v20 }
  0x43   : > { %v513_v22 = vpop.eup %512 }
  0x44   : > { %255 = vst [vmem:[#allocation1] ss:$2 sm:$0xff] %v513_v22 }
  0x4b   : > { %v256_v27 = vld.sshfl [vmem:[#allocation1] sm:$0xff pattern:$0x75316420]  ;;  %v257_v28 = vld.sshfl [vmem:[#allocation1 + $0x8] sm:$0xff pattern:$0x75316420] }
  0x4c   : > { %v260_v29 = vsel %vm231_vm0, %v256_v27, 0.0  ;;  %v267_v30 = vsel %vm231_vm0, %v257_v28, 0.0  ;;  %288 = vst [vmem:[#allocation1] ss:$2 sm:$0xff] %v213_v0 }
  0x4d   : > { %v261_v32 = vrot.slane %v260_v29, 4  ;;  %v268_v33 = vrot.slane %v267_v30, 4 }
  0x4f   : > { %v262_v36 = vadd.f32 %v261_v32, %v260_v29  ;;  %v269_v37 = vadd.f32 %v268_v33, %v267_v30 }
  0x51   : > { %v263_v38 = vrot.slane %v262_v36, 2  ;;  %v270_v39 = vrot.slane %v269_v37, 2 }
  0x53   : > { %v264_v40 = vadd.f32 %v263_v38, %v262_v36  ;;  %v271_v41 = vadd.f32 %v270_v39, %v269_v37  ;;  %v289_v42 = vld.sshfl [vmem:[#allocation1] sm:$0xff pattern:$0x75316420]  ;;  %v290_v43 = vld.sshfl [vmem:[#allocation1 + $0x8] sm:$0xff pattern:$0x75316420] }
  0x54   : > { %v293_v44 = vsel %vm286_vm1, %v289_v42, 0.0  ;;  %v294_v45 = vsel %vm287_vm2, %v290_v43, 0.0 }
  0x55   : > { %v265_v46 = vrot.slane %v264_v40, 1  ;;  %v272_v47 = vrot.slane %v271_v41, 1  ;;  %v295_v48 = vsel %vm231_vm0, %v293_v44, 0.0  ;;  %v302_v49 = vsel %vm231_vm0, %v294_v45, 0.0 }
  0x56   : > { %v296_v50 = vrot.slane %v295_v48, 4  ;;  %v303_v51 = vrot.slane %v302_v49, 4 }
  0x57   : > { %v266_v52 = vadd.f32 %v265_v46, %v264_v40  ;;  %v273_v53 = vadd.f32 %v272_v47, %v271_v41 }
  0x58   : > { %v297_v54 = vadd.f32 %v296_v50, %v295_v48  ;;  %v304_v55 = vadd.f32 %v303_v51, %v302_v49 }
  0x59   : > { %514 = vlog2.f32 %v266_v52 }
  0x5a   : > { %516 = vlog2.f32 %v273_v53  ;;  %v298_v56 = vrot.slane %v297_v54, 2  ;;  %v305_v57 = vrot.slane %v304_v55, 2 }
  0x5c   : > { %v299_v58 = vadd.f32 %v298_v56, %v297_v54  ;;  %v306_v59 = vadd.f32 %v305_v57, %v304_v55 }
  0x5e   : > { %v300_v60 = vrot.slane %v299_v58, 1  ;;  %v307_v61 = vrot.slane %v306_v59, 1 }
  0x5f   : > { %v515_v62 = vpop.eup %514 }
  0x60   : > { %v517_v63 = vpop.eup %516  ;;  %v275_v0 = vmul.f32 0.6931472, %v515_v62  ;;  %v301_v1 = vadd.f32 %v300_v60, %v299_v58  ;;  %v308_v3 = vadd.f32 %v307_v61, %v306_v59 }
  0x61   : > { %v277_v2 = vmul.f32 0.6931472, %v517_v63 }
  0x62   : > { %v278_v4 = vadd.f32 %v275_v0, %v732_v15 }
  0x63   : > { %v279_v5 = vadd.f32 %v277_v2, %v734_v16 }
  0x64   : > { %v309_v6 = vsub.f32 %v278_v4, %v301_v1 }
  0x65   : > { %v310_v7 = vsub.f32 %v279_v5, %v308_v3 }
  0x66   : > { %v314_v8 = vsel %vm313_vm3, %v309_v6, 0.0 }
  0x67   : > { %v315_v9 = vsel %vm313_vm3, %v310_v7, 0.0 }
  0x68   : > { %v316_v10 = vadd.f32 %v315_v9, %v314_v8 }
  0x6a   : > { %317 = vadd.xlane.f32.xlu0 %v316_v10 }
  0xdd   : > { %v318_v11 = vpop.xlane.xlu0 %317 }
  0xde   : > { %v319_v12 = vrot.slane %v318_v11, 4 }
  0xe0   : > { %v320_v13 = vadd.f32 %v319_v12, %v318_v11 }
  0xe2   : > { %v321_v14 = vrot.slane %v320_v13, 2 }
  0xe4   : > { %v322_v17 = vadd.f32 %v321_v14, %v320_v13 }
  0xe6   : > { %v323_v18 = vrot.slane %v322_v17, 1 }
  0xe8   : > { %v324_v19 = vadd.f32 %v323_v18, %v322_v17 }
  0xea   : > { %448 = vpush %v324_v19 }
 0x11b   : > { %s449_s4 = spop %448 }
 0x11c   : > { %v326_v15 = vstv %s449_s4 }
 0x11d   : > { %327 = vst [vmem:[%s202_s29] sm:$0x1] %v326_v15 }
 0x11e   : > { %575 = shalt.err (!%p572_p0)
}
 0x11f   : > { %452 = dma.vmem_to_hbm [thread:$0]  (%p698_p9), %s341_s30, 16, %s343_s3, %s329_s5  }
 0x120 PF: > { %s354_s7 = sand.u32 1, %s610_s9   ;;  %p459_p1 = pnand %p438_p12, %p705_p11 }
 0x121   : > { %s355_s20 = scalar_lea.sflag [#allocation4], %s354_s7 }
 0x122   : > { %p460_p2 = pneg %p459_p1 }
 0x124   : > { %605 = dma.done.wait (%p460_p2), %s355_s20, 16  }
 0x125   : > { %607 = vsyncadd (%p460_p2), %s355_s20, 4294967280  ;;  %s18_s14 = sadd.s32 1, %s630_s14   ;;  %s795_s9 = smov %s614_s10 }
 0x126   : > { %p15_p3 = scmp.ge.s32.totalorder %s18_s14, 4   ;;  %s796_s10 = smov %s618_s11 }
 0x127   : > { %s797_s11 = smov %s703_s23  ;;  %s798_s12 = smov %s626_s13 }
 0x128   : > { %s799_s13 = smov %s801_s17  ;;  %17 = sbr.rel (!%p15_p3) target bundleno = 6 (0x6), region = 76 }
 0x12d   :  { %360 = vsyncpa [#allocation3], 1 }
 0x12e   :  { %362 = vsyncpa [#allocation3 + $0x1], 1 }
 0x12f   :  { %363 = vsyncpa [#allocation4], 1 }
 0x130   :  { %365 = vsyncpa [#allocation4 + $0x1], 1 }

</bundles_post_ra>
